<compile_context>
chip_gen: v5e
topology: v5e:2x2
jax: 0.10.0
libtpu: 0.0.40
codegen_flags: <defaults>
</compile_context>

<pallas_src>
import functools

import jax
import jax.numpy as jnp
from jax.experimental import pallas as pl
from jax.experimental.pallas import tpu as pltpu


def _silu(z):
    return z * jax.nn.sigmoid(z)


def _round_up(x, m):
    return ((x + m - 1) // m) * m


# ------------------------------- kernel -------------------------------------


def force_block_kernel(feats_ref, wa_ref, ws_ref, bias_ref, out_ref, *, H, O1):
    # Static column offsets inside the packed small-matrix slab.
    c_u1av = 0
    c_u2a = c_u1av + H
    c_wb = c_u2a + 2 * O1
    c_u1b = c_wb + 3 * O1 + 3
    c_u2b = c_u1b + O1

    feats = feats_ref[...]                 # [tn, 4H] raw node features
    ws = ws_ref[...]                       # packed small matrices
    bias = bias_ref[...]                   # [1, H + 3*O1 + 2] packed biases
    b1a = bias[:, 0:H]
    b2a = bias[:, H:H + 2 * O1]
    b1b = bias[:, H + 2 * O1:H + 3 * O1]
    b2b = bias[:, H + 3 * O1:H + 3 * O1 + 2]

    # ---- GatedEquivariantBlock 1 (H -> O1): one fused MXU op --------------
    # columns: [P_x|P_y|P_z | V2_x|V2_y|V2_z | x @ u1a_x]
    a = jnp.dot(feats, wa_ref[...], preferred_element_type=jnp.float32)
    px, py, pz = a[:, 0:H], a[:, H:2 * H], a[:, 2 * H:3 * H]
    vec2_pack = a[:, 3 * H:3 * H + 3 * O1]            # [tn, 3*O1]
    xu = a[:, 3 * H + 3 * O1:]                        # x-half of update net

    vec1 = jnp.sqrt(px * px + py * py + pz * pz)      # norm over Cartesian axis
    u = _silu(xu
              + jnp.dot(vec1, ws[0:H, c_u1av:c_u1av + H],
                        preferred_element_type=jnp.float32)
              + b1a)
    o = jnp.dot(u, ws[0:H, c_u2a:c_u2a + 2 * O1],
                preferred_element_type=jnp.float32) + b2a
    xs, vs = o[:, :O1], o[:, O1:]
    x2 = _silu(xs)                                              # [tn, O1]
    v2 = jnp.concatenate([vs, vs, vs], axis=-1) * vec2_pack     # [tn, 3*O1]

    # ---- GatedEquivariantBlock 2 (O1 -> 1): block-diagonal fused weight ---
    b = jnp.dot(v2, ws[0:3 * O1, c_wb:c_wb + 3 * O1 + 3],
                preferred_element_type=jnp.float32)
    p2x, p2y, p2z = b[:, 0:O1], b[:, O1:2 * O1], b[:, 2 * O1:3 * O1]
    vec2b = b[:, 3 * O1:3 * O1 + 3]                             # [tn, 3]
    vec1b = jnp.sqrt(p2x * p2x + p2y * p2y + p2z * p2z)

    # Fused layer-2 update net: single matmul on concat([x2, vec1b]).
    h2 = jnp.concatenate([x2, vec1b], axis=-1)                  # [tn, 2*O1]
    u2 = _silu(jnp.dot(h2, ws[0:2 * O1, c_u1b:c_u1b + O1],
                       preferred_element_type=jnp.float32) + b1b)
    o2 = jnp.dot(u2, ws[0:O1, c_u2b:c_u2b + 2],
                 preferred_element_type=jnp.float32) + b2b
    vs2 = o2[:, 1:2]                                            # vector gate

    # Lane-dense store: [3, tn] -> full-lane vst + contiguous HBM writeback.
    out_ref[...] = jnp.transpose(vs2 * vec2b).astype(out_ref.dtype)


# --------------------------- weight preparation ------------------------------


def _fold_component(w, c):
    """[H, out] -> [4H, out]: row (H + 3*h + c) = w[h, :], zeros elsewhere."""
    Hc, out = w.shape
    zeros = jnp.zeros_like(w)
    parts = [w if i == c else zeros for i in range(3)]
    vec_rows = jnp.stack(parts, axis=1).reshape(3 * Hc, out)    # row 3h+c = w[h]
    return jnp.concatenate([jnp.zeros((Hc, out), w.dtype), vec_rows], axis=0)


def prepare_force_block_params(params, *, l0_mul, l1_mul):
    """Fold / pack PyTorch-layout parameters into the kernel's fused weights.

    Call ONCE per parameter set (hoisted out of the per-step forward path).
    """
    assert l0_mul == l1_mul, "ForceBlock assert implies l0_h == l1_h"
    H = l0_mul
    O1 = H // 2
    (w1a, w2a, u1a, b1a, u2a, b2a, w1b, w2b, u1b, b1b, u2b, b2b) = params

    # Layer 1: raw node_feats [., 4H] -> [P_x|P_y|P_z | V2_x|V2_y|V2_z | x@u1a_x]
    cols_p = jnp.concatenate([_fold_component(w1a, c) for c in range(3)], axis=1)
    cols_v = jnp.concatenate([_fold_component(w2a, c) for c in range(3)], axis=1)
    cols_x = jnp.concatenate([u1a[:H], jnp.zeros((3 * H, H), u1a.dtype)], axis=0)
    wa = jnp.concatenate([cols_p, cols_v, cols_x], axis=1)      # [4H, 4H + 3*O1]

    # Layer 2: block-diagonal projections over packed [., 3*O1] vectors.
    eye3 = jnp.eye(3, dtype=w1b.dtype)
    wb = jnp.concatenate([jnp.kron(eye3, w1b), jnp.kron(eye3, w2b)], axis=1)

    # Pack the remaining small matrices into one slab (zero-padded rows).
    R = max(3 * O1, H)

    def pad_rows(w):
        return jnp.concatenate(
            [w, jnp.zeros((R - w.shape[0], w.shape[1]), w.dtype)], axis=0)

    ws = jnp.concatenate(
        [pad_rows(u1a[H:]),    # vec1-half of layer-1 update net   [H, H]
         pad_rows(u2a),        # layer-1 update net, 2nd linear    [H, 2*O1]
         pad_rows(wb),         # fused layer-2 projections         [3*O1, 3*O1+3]
         pad_rows(u1b),        # layer-2 update net, 1st linear    [2*O1, O1]
         pad_rows(u2b)],       # layer-2 update net, 2nd linear    [O1, 2]
        axis=1)

    bias = jnp.concatenate([b1a, b2a, b1b, b2b], axis=1)        # [1, H+3*O1+2]
    return (wa, ws, bias)


# -------------------------------- wrapper ------------------------------------


def force_block(node_feats, prepared, *, l0_mul, l1_mul, tile_n_max=512):
    """node_feats: [N, 4H] float32 -> forces [N, 3] (ForceBlock.forward)."""
    assert l0_mul == l1_mul, "ForceBlock assert implies l0_h == l1_h"
    H = l0_mul
    O1 = H // 2
    N = node_feats.shape[0]
    assert node_feats.shape[1] == 4 * H
    wa, ws, bias = prepared

    # ---- tile selection (no input padding; Pallas masks the ragged tail) ---
    # per-row f32 footprint upper bound: feats (4H) + in-flight intermediates.
    bytes_per_row = 4 * 24 * H
    vmem_budget = 8 << 20                   # stays below v5e's 16 MiB default
    tile_cap = max(128, (vmem_budget // bytes_per_row) // 128 * 128)
    tile_n_max = min(_round_up(tile_n_max, 128), tile_cap)

    if N <= 256:
        tile_n = N                          # single full-extent block
    else:
        # >= 2 grid steps so both v7x TensorCores get work; lane-dense tiles.
        tile_n = min(tile_n_max, _round_up(pl.cdiv(N, 2), 128))
    grid_n = pl.cdiv(N, tile_n)

    weight_bytes = sum(int(a.size) * a.dtype.itemsize for a in (wa, ws, bias))
    est_vmem = (2 * weight_bytes + tile_n * bytes_per_row
                + 2 * tile_n * 4 * (4 * H + 3))
    vmem_limit = int(min(max(2 * est_vmem, 16 << 20), 48 << 20))

    CA = 4 * H + 3 * O1
    CB = 3 * O1 + 3
    flops_per_row = 2 * (4 * H * CA + H * H + H * 2 * O1
                         + 3 * O1 * CB + 2 * O1 * O1 + 2 * O1)
    cost = pl.CostEstimate(
        flops=int(N) * flops_per_row,
        transcendentals=int(N) * (H + 2 * O1),
        bytes_accessed=int(N) * (4 * H + 3) * 4 + weight_bytes,
    )

    out_t = pl.pallas_call(
        functools.partial(force_block_kernel, H=H, O1=O1),
        out_shape=jax.ShapeDtypeStruct((3, N), jnp.float32),
        grid=(grid_n,),
        in_specs=[
            pl.BlockSpec((tile_n, 4 * H), lambda i: (i, 0)),
            pl.BlockSpec(wa.shape, lambda i: (0, 0)),        # grid-invariant
            pl.BlockSpec(ws.shape, lambda i: (0, 0)),
            pl.BlockSpec(bias.shape, lambda i: (0, 0)),
        ],
        out_specs=pl.BlockSpec((3, tile_n), lambda i: (0, i)),
        compiler_params=pltpu.CompilerParams(
            dimension_semantics=("parallel",),
            vmem_limit_bytes=vmem_limit,
        ),
        cost_estimate=cost,
    )(node_feats, wa, ws, bias)

    return jnp.transpose(out_t)             # [N, 3]


# ----------------------------- reference & test ------------------------------


def _xavier(key, shape):
    fan_in, fan_out = shape[0], shape[1]
    limit = jnp.sqrt(6.0 / (fan_in + fan_out))
    return jax.random.uniform(key, shape, jnp.float32, -limit, limit)


def make_params(key, H):
    """Deterministic parameter init; all matrices stored as [in, out]."""
    O1 = H // 2
    ks = jax.random.split(key, 8)
    # layer 1: GatedEquivariantBlock(H, H, H//2)
    w1a = _xavier(ks[0], (H, H))
    w2a = _xavier(ks[1], (H, O1))
    u1a = _xavier(ks[2], (2 * H, H))
    b1a = jnp.zeros((1, H), jnp.float32)
    u2a = _xavier(ks[3], (H, 2 * O1))
    b2a = jnp.zeros((1, 2 * O1), jnp.float32)
    # layer 2: GatedEquivariantBlock(H//2, H//2, 1)
    w1b = _xavier(ks[4], (O1, O1))
    w2b = _xavier(ks[5], (O1, 1))
    u1b = _xavier(ks[6], (2 * O1, O1))
    b1b = jnp.zeros((1, O1), jnp.float32)
    u2b = _xavier(ks[7], (O1, 2))
    b2b = jnp.zeros((1, 2), jnp.float32)
    return (w1a, w2a, u1a, b1a, u2a, b2a, w1b, w2b, u1b, b1b, u2b, b2b)


def force_block_ref(node_feats, params, *, l0_mul, l1_mul):
    """Pure-JAX reference mirroring the PyTorch forward."""
    H = l0_mul
    N = node_feats.shape[0]
    (w1a, w2a, u1a, b1a, u2a, b2a, w1b, w2b, u1b, b1b, u2b, b2b) = params

    x = node_feats[:, :H]
    v = jnp.transpose(node_feats[:, H:4 * H].reshape(N, H, 3), (0, 2, 1))  # [N,3,H]

    def block(x, v, w1, w2, u1, b1, u2, b2, out_ch):
        vec1 = jnp.linalg.norm(v @ w1, axis=-2)
        vec2 = v @ w2
        h = jnp.concatenate([x, vec1], axis=-1)
        o = jax.nn.silu(h @ u1 + b1) @ u2 + b2
        xs, vs = o[:, :out_ch], o[:, out_ch:]
        return jax.nn.silu(xs), vs[:, None, :] * vec2

    x, v = block(x, v, w1a, w2a, u1a, b1a, u2a, b2a, H // 2)
    x, v = block(x, v, w1b, w2b, u1b, b1b, u2b, b2b, 1)
    return jnp.squeeze(v, axis=-1)  # [N, 3]


if __name__ == "__main__":
    H = 32          # l0_h == l1_h (ForceBlock assert)

    key = jax.random.PRNGKey(0)
    k_feat, k_par = jax.random.split(key)
    params = make_params(k_par, H)

    # Fused / packed weights built once per parameter set (hoisted out of
    # the per-call forward path).
    prepared = jax.block_until_ready(
        prepare_force_block_params(params, l0_mul=H, l1_mul=H))

    ok = True
    # N=19: single full-extent block (ragged, not a multiple of 8).
    # N=300: multi-block grid (>=2 steps for v7x) with a ragged tail block.
    for N in (19, 300):
        feats = jax.random.normal(jax.random.fold_in(k_feat, N),
                                  (N, H + 3 * H), jnp.float32)
        out = jax.block_until_ready(force_block(feats, prepared,
                                                l0_mul=H, l1_mul=H))
        ref = force_block_ref(feats, params, l0_mul=H, l1_mul=H)
        assert out.shape == (N, 3)
        ok = ok and bool(jnp.allclose(out, ref, atol=2e-5, rtol=2e-5))
    assert ok, "mismatch vs JAX reference"

    print("KERNEL_OK")
</pallas_src>

<mosaic_0001>
module attributes {stable_mosaic.version = 11 : i64} {
  func.func @force_block_kernel(%arg0: i32, %arg1: memref<19x128xf32, #tpu.memory_space<vmem>>, %arg2: memref<128x176xf32, #tpu.memory_space<vmem>>, %arg3: memref<48x133xf32, #tpu.memory_space<vmem>>, %arg4: memref<1x82xf32, #tpu.memory_space<vmem>>, %arg5: memref<3x19xf32, #tpu.memory_space<vmem>>) attributes {dimension_semantics = [#tpu.dimension_semantics<parallel>], iteration_bounds = array<i64: 1>, scalar_prefetch = 0 : i64, scratch_operands = 0 : i64, tpu.core_type = #tpu.core_type<tc>, window_params = [{transform_indices = @transform_0, window_bounds = array<i64: 19, 128>}, {pipeline_mode = #tpu.pipeline_mode<synchronous>, transform_indices = @transform_1, window_bounds = array<i64: 128, 176>}, {pipeline_mode = #tpu.pipeline_mode<synchronous>, transform_indices = @transform_2, window_bounds = array<i64: 48, 133>}, {pipeline_mode = #tpu.pipeline_mode<synchronous>, transform_indices = @transform_3, window_bounds = array<i64: 1, 82>}, {transform_indices = @transform_4, window_bounds = array<i64: 3, 19>}]} {
    %c0 = arith.constant 0 : index
    %c0_0 = arith.constant 0 : index
    %0 = vector.load %arg1[%c0, %c0_0] : memref<19x128xf32, #tpu.memory_space<vmem>>, vector<19x128xf32>
    %c0_1 = arith.constant 0 : index
    %c0_2 = arith.constant 0 : index
    %1 = vector.load %arg3[%c0_1, %c0_2] : memref<48x133xf32, #tpu.memory_space<vmem>>, vector<48x133xf32>
    %c0_3 = arith.constant 0 : index
    %c0_4 = arith.constant 0 : index
    %2 = vector.load %arg4[%c0_3, %c0_4] : memref<1x82xf32, #tpu.memory_space<vmem>>, vector<1x82xf32>
    %3 = vector.extract_strided_slice %2 {offsets = [0, 0], sizes = [1, 32], strides = [1, 1]} : vector<1x82xf32> to vector<1x32xf32>
    %4 = vector.extract_strided_slice %2 {offsets = [0, 32], sizes = [1, 32], strides = [1, 1]} : vector<1x82xf32> to vector<1x32xf32>
    %5 = vector.extract_strided_slice %2 {offsets = [0, 64], sizes = [1, 16], strides = [1, 1]} : vector<1x82xf32> to vector<1x16xf32>
    %6 = vector.extract_strided_slice %2 {offsets = [0, 80], sizes = [1, 2], strides = [1, 1]} : vector<1x82xf32> to vector<1x2xf32>
    %c0_5 = arith.constant 0 : index
    %c0_6 = arith.constant 0 : index
    %7 = vector.load %arg2[%c0_5, %c0_6] : memref<128x176xf32, #tpu.memory_space<vmem>>, vector<128x176xf32>
    %cst = arith.constant dense<0.000000e+00> : vector<19x176xf32>
    %8 = tpu.matmul %0, %7, %cst {dimension_numbers = #tpu.dot_dimension_numbers<[1], [0], [0], [1], [0, 0, 1, 1], [], []>} : vector<19x128xf32>, vector<128x176xf32>, vector<19x176xf32> -> vector<19x176xf32>
    %9 = vector.extract_strided_slice %8 {offsets = [0, 0], sizes = [19, 32], strides = [1, 1]} : vector<19x176xf32> to vector<19x32xf32>
    %10 = vector.extract_strided_slice %8 {offsets = [0, 32], sizes = [19, 32], strides = [1, 1]} : vector<19x176xf32> to vector<19x32xf32>
    %11 = vector.extract_strided_slice %8 {offsets = [0, 64], sizes = [19, 32], strides = [1, 1]} : vector<19x176xf32> to vector<19x32xf32>
    %12 = vector.extract_strided_slice %8 {offsets = [0, 96], sizes = [19, 48], strides = [1, 1]} : vector<19x176xf32> to vector<19x48xf32>
    %13 = vector.extract_strided_slice %8 {offsets = [0, 144], sizes = [19, 32], strides = [1, 1]} : vector<19x176xf32> to vector<19x32xf32>
    %14 = arith.mulf %9, %9 : vector<19x32xf32>
    %15 = arith.mulf %10, %10 : vector<19x32xf32>
    %16 = arith.addf %14, %15 : vector<19x32xf32>
    %17 = arith.mulf %11, %11 : vector<19x32xf32>
    %18 = arith.addf %16, %17 : vector<19x32xf32>
    %19 = math.sqrt %18 : vector<19x32xf32>
    %20 = vector.extract_strided_slice %1 {offsets = [0, 0], sizes = [32, 32], strides = [1, 1]} : vector<48x133xf32> to vector<32x32xf32>
    %cst_7 = arith.constant dense<0.000000e+00> : vector<19x32xf32>
    %21 = tpu.matmul %19, %20, %cst_7 {dimension_numbers = #tpu.dot_dimension_numbers<[1], [0], [0], [1], [0, 0, 1, 1], [], []>} : vector<19x32xf32>, vector<32x32xf32>, vector<19x32xf32> -> vector<19x32xf32>
    %22 = arith.addf %13, %21 : vector<19x32xf32>
    %23 = vector.broadcast %3 : vector<1x32xf32> to vector<19x32xf32>
    %24 = arith.addf %22, %23 : vector<19x32xf32>
    %25 = arith.negf %24 : vector<19x32xf32>
    %26 = math.exp %25 : vector<19x32xf32>
    %cst_8 = arith.constant 1.000000e+00 : f32
    %27 = vector.broadcast %cst_8 : f32 to vector<19x32xf32>
    %28 = arith.addf %27, %26 : vector<19x32xf32>
    %29 = arith.divf %27, %28 : vector<19x32xf32>
    %30 = arith.mulf %24, %29 : vector<19x32xf32>
    %31 = vector.extract_strided_slice %1 {offsets = [0, 32], sizes = [32, 32], strides = [1, 1]} : vector<48x133xf32> to vector<32x32xf32>
    %cst_9 = arith.constant dense<0.000000e+00> : vector<19x32xf32>
    %32 = tpu.matmul %30, %31, %cst_9 {dimension_numbers = #tpu.dot_dimension_numbers<[1], [0], [0], [1], [0, 0, 1, 1], [], []>} : vector<19x32xf32>, vector<32x32xf32>, vector<19x32xf32> -> vector<19x32xf32>
    %33 = vector.broadcast %4 : vector<1x32xf32> to vector<19x32xf32>
    %34 = arith.addf %32, %33 : vector<19x32xf32>
    %35 = vector.extract_strided_slice %34 {offsets = [0, 0], sizes = [19, 16], strides = [1, 1]} : vector<19x32xf32> to vector<19x16xf32>
    %36 = vector.extract_strided_slice %34 {offsets = [0, 16], sizes = [19, 16], strides = [1, 1]} : vector<19x32xf32> to vector<19x16xf32>
    %37 = arith.negf %35 : vector<19x16xf32>
    %38 = math.exp %37 : vector<19x16xf32>
    %cst_10 = arith.constant 1.000000e+00 : f32
    %39 = vector.broadcast %cst_10 : f32 to vector<19x16xf32>
    %40 = arith.addf %39, %38 : vector<19x16xf32>
    %41 = arith.divf %39, %40 : vector<19x16xf32>
    %42 = arith.mulf %35, %41 : vector<19x16xf32>
    %43 = tpu.concatenate %36, %36, %36 in 1 : vector<19x16xf32>, vector<19x16xf32>, vector<19x16xf32> -> vector<19x48xf32>
    %44 = arith.mulf %43, %12 : vector<19x48xf32>
    %45 = vector.extract_strided_slice %1 {offsets = [0, 64], sizes = [48, 51], strides = [1, 1]} : vector<48x133xf32> to vector<48x51xf32>
    %cst_11 = arith.constant dense<0.000000e+00> : vector<19x51xf32>
    %46 = tpu.matmul %44, %45, %cst_11 {dimension_numbers = #tpu.dot_dimension_numbers<[1], [0], [0], [1], [0, 0, 1, 1], [], []>} : vector<19x48xf32>, vector<48x51xf32>, vector<19x51xf32> -> vector<19x51xf32>
    %47 = vector.extract_strided_slice %46 {offsets = [0, 0], sizes = [19, 16], strides = [1, 1]} : vector<19x51xf32> to vector<19x16xf32>
    %48 = vector.extract_strided_slice %46 {offsets = [0, 16], sizes = [19, 16], strides = [1, 1]} : vector<19x51xf32> to vector<19x16xf32>
    %49 = vector.extract_strided_slice %46 {offsets = [0, 32], sizes = [19, 16], strides = [1, 1]} : vector<19x51xf32> to vector<19x16xf32>
    %50 = vector.extract_strided_slice %46 {offsets = [0, 48], sizes = [19, 3], strides = [1, 1]} : vector<19x51xf32> to vector<19x3xf32>
    %51 = arith.mulf %47, %47 : vector<19x16xf32>
    %52 = arith.mulf %48, %48 : vector<19x16xf32>
    %53 = arith.addf %51, %52 : vector<19x16xf32>
    %54 = arith.mulf %49, %49 : vector<19x16xf32>
    %55 = arith.addf %53, %54 : vector<19x16xf32>
    %56 = math.sqrt %55 : vector<19x16xf32>
    %57 = tpu.concatenate %42, %56 in 1 : vector<19x16xf32>, vector<19x16xf32> -> vector<19x32xf32>
    %58 = vector.extract_strided_slice %1 {offsets = [0, 115], sizes = [32, 16], strides = [1, 1]} : vector<48x133xf32> to vector<32x16xf32>
    %cst_12 = arith.constant dense<0.000000e+00> : vector<19x16xf32>
    %59 = tpu.matmul %57, %58, %cst_12 {dimension_numbers = #tpu.dot_dimension_numbers<[1], [0], [0], [1], [0, 0, 1, 1], [], []>} : vector<19x32xf32>, vector<32x16xf32>, vector<19x16xf32> -> vector<19x16xf32>
    %60 = vector.broadcast %5 : vector<1x16xf32> to vector<19x16xf32>
    %61 = arith.addf %59, %60 : vector<19x16xf32>
    %62 = arith.negf %61 : vector<19x16xf32>
    %63 = math.exp %62 : vector<19x16xf32>
    %cst_13 = arith.constant 1.000000e+00 : f32
    %64 = vector.broadcast %cst_13 : f32 to vector<19x16xf32>
    %65 = arith.addf %64, %63 : vector<19x16xf32>
    %66 = arith.divf %64, %65 : vector<19x16xf32>
    %67 = arith.mulf %61, %66 : vector<19x16xf32>
    %68 = vector.extract_strided_slice %1 {offsets = [0, 131], sizes = [16, 2], strides = [1, 1]} : vector<48x133xf32> to vector<16x2xf32>
    %cst_14 = arith.constant dense<0.000000e+00> : vector<19x2xf32>
    %69 = tpu.matmul %67, %68, %cst_14 {dimension_numbers = #tpu.dot_dimension_numbers<[1], [0], [0], [1], [0, 0, 1, 1], [], []>} : vector<19x16xf32>, vector<16x2xf32>, vector<19x2xf32> -> vector<19x2xf32>
    %70 = vector.broadcast %6 : vector<1x2xf32> to vector<19x2xf32>
    %71 = arith.addf %69, %70 : vector<19x2xf32>
    %72 = vector.extract_strided_slice %71 {offsets = [0, 1], sizes = [19, 1], strides = [1, 1]} : vector<19x2xf32> to vector<19x1xf32>
    %73 = vector.broadcast %72 : vector<19x1xf32> to vector<19x3xf32>
    %74 = arith.mulf %73, %50 : vector<19x3xf32>
    %75 = tpu.transpose %74, [1, 0] : vector<19x3xf32> -> vector<3x19xf32>
    %c0_15 = arith.constant 0 : index
    %c0_16 = arith.constant 0 : index
    %76 = vector.load %arg5[%c0_15, %c0_16] : memref<3x19xf32, #tpu.memory_space<vmem>>, vector<3x19xf32>
    tpu.vector_store %arg5[%c0_15, %c0_16], %75 {strides = array<i32>} : memref<3x19xf32, #tpu.memory_space<vmem>>, vector<3x19xf32>,
    return
  }
  func.func @transform_0(%arg0: i32) -> (i32, i32) {
    %c0_i32 = arith.constant 0 : i32
    %c0_i32_0 = arith.constant 0 : i32
    return %arg0, %c0_i32 : i32, i32
  }
  func.func @transform_1(%arg0: i32) -> (i32, i32) {
    %c0_i32 = arith.constant 0 : i32
    %c0_i32_0 = arith.constant 0 : i32
    %c0_i32_1 = arith.constant 0 : i32
    return %c0_i32, %c0_i32_0 : i32, i32
  }
  func.func @transform_2(%arg0: i32) -> (i32, i32) {
    %c0_i32 = arith.constant 0 : i32
    %c0_i32_0 = arith.constant 0 : i32
    %c0_i32_1 = arith.constant 0 : i32
    return %c0_i32, %c0_i32_0 : i32, i32
  }
  func.func @transform_3(%arg0: i32) -> (i32, i32) {
    %c0_i32 = arith.constant 0 : i32
    %c0_i32_0 = arith.constant 0 : i32
    %c0_i32_1 = arith.constant 0 : i32
    return %c0_i32, %c0_i32_0 : i32, i32
  }
  func.func @transform_4(%arg0: i32) -> (i32, i32) {
    %c0_i32 = arith.constant 0 : i32
    %c0_i32_0 = arith.constant 0 : i32
    return %c0_i32, %arg0 : i32, i32
  }
}

</mosaic_0001>

<bundles_post_ra>
// kernel: tpu_custom_call.1
= control target key start
LH: loop header
LB: loop body
LE: loop exit
PB: predicated region body
PF: predicated region fallthrough
CT: control target
= control target key end

     0   :  { %s1407_s0 = inlined_call_operand.vmem [shape: f32[19,128], index: 0, kind: input, shape index: {}]   ;;  %s1408_s1 = inlined_call_operand.vmem [shape: f32[128,176], index: 1, kind: input, shape index: {}]   ;;  %s1409_s2 = inlined_call_operand.vmem [shape: f32[48,133], index: 2, kind: input, shape index: {}]   ;;  %s1410_s3 = inlined_call_operand.vmem [shape: f32[1,82], index: 3, kind: input, shape index: {}]   ;;  %s1411_s4 = inlined_call_operand.hbm [shape: f32[3,19], index: 4, kind: output, shape index: {}]  }
   0x1   :  { %v62_v0 = vld [vmem:[%s1408_s1 + $0xf0] sm:$0xff]  ;;  %v60_v1 = vld [vmem:[%s1408_s1 + $0xe0] sm:$0xff] }
   0x2   :  { %64 = vmatpush.msra.mxu0 %v62_v0  ;;  %v58_v2 = vld [vmem:[%s1408_s1 + $0xd0] sm:$0xff]  ;;  %v56_v3 = vld [vmem:[%s1408_s1 + $0xc0] sm:$0xff] }
   0x3   :  { %v54_v4 = vld [vmem:[%s1408_s1 + $0xb0] sm:$0xff] }
   0x4   :  { %65 = vmatpush.msra.mxu0 %v60_v1 }
   0x6   :  { %66 = vmatpush.msra.mxu0 %v58_v2 }
   0x7   :  { %9 = vsyncpa [#allocation3], 0  ;;  %v52_v5 = vld [vmem:[%s1408_s1 + $0xa0] sm:$0xff]  ;;  %v50_v6 = vld [vmem:[%s1408_s1 + $0x90] sm:$0xff]  ;;  %s1032_s27 = smov 96   ;;  %s1033_s28 = smov 64  }
   0x8   :  { %67 = vmatpush.msra.mxu0 %v56_v3  ;;  %v48_v7 = vld [vmem:[%s1408_s1 + $0x80] sm:$0xff]  ;;  %v46_v8 = vld [vmem:[%s1408_s1 + $0x70] sm:$0xff]  ;;  %v1125_v17 = vld [vmem:[%s1407_s0 + $0x8] sm:$0xff]  ;;  %s1034_s26 = smov 16   ;;  %vm182_vm1 = vcmask 261120   ;;  %s1036_s19 = smov 32  }
   0x9   :  { %v44_v9 = vld [vmem:[%s1408_s1 + $0x60] sm:$0xff]  ;;  %v42_v10 = vld [vmem:[%s1408_s1 + $0x50] sm:$0xff]  ;;  %v63_v41 = vld [vmem:[%s1408_s1 + $0xf8] sm:$0xff]  ;;  %s1042_s7 = smov [#allocation2]   ;;  %s855_s11 = sshll.u32 %s1411_s4, 4  ;;  %s856_s11 = int_to_ptr.hbm [resolvable:$true] %s855_s11 }
   0xa   :  { %68 = vmatpush.msra.mxu0 %v54_v4  ;;  %v40_v11 = vld [vmem:[%s1408_s1 + $0x40] sm:$0xff]  ;;  %v38_v12 = vld [vmem:[%s1408_s1 + $0x30] sm:$0xff]  ;;  %v61_v42 = vld [vmem:[%s1408_s1 + $0xe8] sm:$0xff]  ;;  %90 = vmatpush.msra.mxu1 %v63_v41  ;;  %s853_s8 = sshll.u32 %s1042_s7, 4  ;;  %s854_s8 = int_to_ptr.vmem [resolvable:$true] %s853_s8 }
   0xb   :  { %v36_v13 = vld [vmem:[%s1408_s1 + $0x20] sm:$0xff]  ;;  %v34_v14 = vld [vmem:[%s1408_s1 + $0x10] sm:$0xff]  ;;  %v59_v46 = vld [vmem:[%s1408_s1 + $0xd8] sm:$0xff] }
   0xc   :  { %69 = vmatpush.msra.mxu0 %v52_v5  ;;  %v32_v15 = vld [vmem:[%s1408_s1] sm:$0xff]  ;;  %v1131_v18 = vld [vmem:[%s1407_s0 + $0x10] sm:$0x7]  ;;  %91 = vmatpush.msra.mxu1 %v61_v42  ;;  %v57_v49 = vld [vmem:[%s1408_s1 + $0xc8] sm:$0xff] }
   0xd   :  { %v1119_v16 = vld [vmem:[%s1407_s0] sm:$0xff]  ;;  %v1155_v25 = vld [vmem:[%s1409_s2 + $0x30] sm:$0xff]  ;;  %v55_v51 = vld [vmem:[%s1408_s1 + $0xb8] sm:$0xff] }
   0xe   :  { %70 = vmatpush.msra.mxu0 %v50_v6  ;;  %v1160_v26 = vld [vmem:[%s1409_s2 + $0x20] sm:$0xff]  ;;  %204 = vmatpush.msra.mxu2 %v1155_v25  ;;  %v1166_v27 = vld [vmem:[%s1409_s2 + $0x10] sm:$0xff]  ;;  %v53_v54 = vld [vmem:[%s1408_s1 + $0xa8] sm:$0xff] }
   0xf   :  { %v1172_v28 = vld [vmem:[%s1409_s2] sm:$0xff]  ;;  %92 = vmatpush.msra.mxu1 %v59_v46  ;;  %v51_v59 = vld [vmem:[%s1408_s1 + $0x98] sm:$0xff]  ;;  %v49_v63 = vld [vmem:[%s1408_s1 + $0x88] sm:$0xff] }
  0x10   :  { %71 = vmatpush.msra.mxu0 %v48_v7  ;;  %205 = vmatpush.msra.mxu2 %v1160_v26  ;;  %v1201_v55 = vld [vmem:[%s1410_s3] ss:$0 sm:$0xff]  ;;  %v47_v3 = vld [vmem:[%s1408_s1 + $0x78] sm:$0xff]  ;;  %v45_v7 = vld [vmem:[%s1408_s1 + $0x68] sm:$0xff]  ;;  %s1037_s3 = smov 13  }
  0x11   :  { %93 = vmatpush.msra.mxu1 %v57_v49 }
  0x12   :  { %72 = vmatpush.msra.mxu0 %v46_v8  ;;  %206 = vmatpush.msra.mxu2 %v1166_v27 }
  0x13   :  { %94 = vmatpush.msra.mxu1 %v55_v51 }
  0x14   :  { %73 = vmatpush.msra.mxu0 %v44_v9  ;;  %207 = vmatpush.msra.mxu2 %v1172_v28  ;;  %v43_v9 = vld [vmem:[%s1408_s1 + $0x58] sm:$0xff] }
  0x15   :  { %95 = vmatpush.msra.mxu1 %v53_v54 }
  0x16   :  { %74 = vmatpush.msra.mxu0 %v42_v10 }
  0x17   :  { %96 = vmatpush.msra.mxu1 %v51_v59 }
  0x18   :  { %75 = vmatpush.msra.mxu0 %v40_v11 }
  0x19   :  { %97 = vmatpush.msra.mxu1 %v49_v63 }
  0x1a   :  { %76 = vmatpush.msra.mxu0 %v38_v12  ;;  %v41_v12 = vld [vmem:[%s1408_s1 + $0x48] sm:$0xff] }
  0x1b   :  { %98 = vmatpush.msra.mxu1 %v47_v3 }
  0x1c   :  { %77 = vmatpush.msra.mxu0 %v36_v13 }
  0x1d   :  { %99 = vmatpush.msra.mxu1 %v45_v7 }
  0x1e   :  { %78 = vmatpush.msra.mxu0 %v34_v14 }
  0x1f   :  { %100 = vmatpush.msra.mxu1 %v43_v9 }
  0x20   :  { %79 = vmatpush.msra.mxu0 %v32_v15  ;;  %v39_v15 = vld [vmem:[%s1408_s1 + $0x38] sm:$0xff] }
  0x21   :  { %80 = vmatmul.f32.vlgmr.msra.gmra.mxu0 %v1119_v16  ;;  %101 = vmatpush.msra.mxu1 %v41_v12 }
  0x23   :  { %102 = vmatpush.msra.mxu1 %v39_v15 }
  0x29   :  { %83 = vmatmul.f32.gmra.mxu0 %v1125_v17 }
  0x31   :  { %86 = vmatmul.f32.gmra.mxu0 %v1131_v18 }
  0x9e   :  { %v1134_v19 = vpop.f32.mrf.mxu0 }
  0x9f   :  { %v116_v20 = vmul.f32 %v1134_v19, %v1134_v19 }
  0xa1   :  { %122 = vrot.lane.b32.xlu0 %v116_v20, %s1032_s27 }
  0xa6   :  { %v1139_v21 = vpop.f32.mrf.mxu0 }
  0xa7   :  { %v117_v22 = vmul.f32 %v1139_v21, %v1139_v21 }
  0xa9   :  { %134 = vrot.lane.b32.xlu0 %v116_v20, %s1033_s28  ;;  %124 = vrot.lane.b32.xlu1 %v117_v22, %s1032_s27 }
  0xae   :  { %v1145_v23 = vpop.f32.mrf.mxu0 }
  0xaf   :  { %v118_v24 = vmul.f32 %v1145_v23, %v1145_v23 }
  0xb1   :  { %136 = vrot.lane.b32.xlu1 %v117_v22, %s1033_s28  ;;  %126 = vrot.lane.b32.xlu2 %v118_v24, %s1032_s27 }
  0xb9   :  { %138 = vrot.lane.b32.xlu2 %v118_v24, %s1033_s28  ;;  %235 = vrot.lane.b32.xlu1 %v1201_v55, %s1034_s26 }
 0x10b   :  { %v127_v29 = vpop.permute.xlu2 %126 }
 0x10c   :  { %v133_v32 = vadd.f32 %v127_v29, %v118_v24  ;;  %v37_v24 = vld [vmem:[%s1408_s1 + $0x28] sm:$0xff]  ;;  %v35_v29 = vld [vmem:[%s1408_s1 + $0x18] sm:$0xff] }
 0x10d   :  { %103 = vmatpush.msra.mxu1 %v37_v24 }
 0x10f   :  { %104 = vmatpush.msra.mxu1 %v35_v29 }
 0x113   :  { %v123_v30 = vpop.permute.xlu0 %122  ;;  %v139_v31 = vpop.permute.xlu2 %138 }
 0x114   :  { %v1176_v33 = vadd.f32 %v139_v31, %v133_v32  ;;  %v131_v34 = vadd.f32 %v123_v30, %v116_v20  ;;  %v33_v31 = vld [vmem:[%s1408_s1 + $0x8] sm:$0xff]  ;;  %s1035_s1 = smov 112  }
 0x115   :  { %105 = vmatpush.msra.mxu1 %v33_v31 }
 0x116   :  { %958 = vrsqrt.f32 %v1176_v33  ;;  %vm177_vm5 = vcmp.eq.f32.partialorder %v1176_v33, inf  ;;  %v180_v32 = vand.u32 2147483648, %v1176_v33  ;;  %vm179_vm6 = vcmp.eq.f32.partialorder %v1176_v33, 0.0  ;;  %106 = vmatmul.f32.vlgmr.msra.gmra.mxu1 %v1119_v16 }
 0x11b   :  { %v135_v35 = vpop.permute.xlu0 %134  ;;  %v125_v36 = vpop.permute.xlu1 %124 }
 0x11c   :  { %v143_v37 = vadd.f32 %v135_v35, %v131_v34  ;;  %v132_v38 = vadd.f32 %v125_v36, %v117_v22  ;;  %v959_v39 = vpop.eup %958 }
 0x11d   :  { %v171_v48 = vmul.f32 %v959_v39, %v1176_v33 }
 0x11e   :  { %960 = vrsqrt.f32 %v143_v37  ;;  %vm153_vm0 = vcmp.eq.f32.partialorder %v143_v37, inf  ;;  %v156_v0 = vand.u32 2147483648, %v143_v37  ;;  %vm155_vm2 = vcmp.eq.f32.partialorder %v143_v37, 0.0  ;;  %109 = vmatmul.f32.gmra.mxu1 %v1125_v17 }
 0x11f   :  { %v172_v53 = vmul.f32 %v959_v39, %v171_v48 }
 0x121   :  { %v173_v62 = vmul.f32 0.5, %v172_v53 }
 0x123   :  { %v137_v40 = vpop.permute.xlu1 %136  ;;  %v174_v6 = vsub.f32 1.5, %v173_v62 }
 0x124   :  { %v961_v43 = vpop.eup %960  ;;  %v144_v44 = vadd.f32 %v137_v40, %v132_v38  ;;  %v1253_v38 = vpack.i.bf16 %v1160_v26, %v1155_v25 }
 0x125   :  { %v147_v45 = vmul.f32 %v961_v43, %v143_v37  ;;  %v175_v11 = vmul.f32 %v959_v39, %v174_v6 }
 0x126   :  { %962 = vrsqrt.f32 %v144_v44  ;;  %vm165_vm3 = vcmp.eq.f32.partialorder %v144_v44, inf  ;;  %v168_v13 = vand.u32 2147483648, %v144_v44  ;;  %vm167_vm4 = vcmp.eq.f32.partialorder %v144_v44, 0.0  ;;  %112 = vmatmul.f32.gmra.mxu1 %v1131_v18  ;;  %905 = vrot.lane.b32.xlu1 %v1253_v38, %s1032_s27 }
 0x127   :  { %v148_v47 = vmul.f32 %v961_v43, %v147_v45  ;;  %v176_v22 = vmul.f32 %v175_v11, %v1176_v33 }
 0x129   :  { %v149_v50 = vmul.f32 0.5, %v148_v47  ;;  %v178_v30 = vsel %vm177_vm5, %v1176_v33, %v176_v22  ;;  %v1263_v47 = vpack.i.bf16 %v1172_v28, %v1166_v27  ;;  %vm496_vm5 = vcmask 392192  }
 0x12a   :  { %v181_v34 = vsel %vm179_vm6, %v180_v32, %v178_v30 }
 0x12b   :  { %v150_v52 = vsub.f32 1.5, %v149_v50  ;;  %v236_v18 = vpop.permute.xlu1 %235 }
 0x12c   :  { %v963_v56 = vpop.eup %962 }
 0x12d   :  { %v151_v57 = vmul.f32 %v961_v43, %v150_v52  ;;  %v159_v58 = vmul.f32 %v963_v56, %v144_v44 }
 0x12f   :  { %v152_v60 = vmul.f32 %v151_v57, %v143_v37  ;;  %v160_v61 = vmul.f32 %v963_v56, %v159_v58 }
 0x131   :  { %v154_v1 = vsel %vm153_vm0, %v143_v37, %v152_v60  ;;  %v161_v2 = vmul.f32 0.5, %v160_v61 }
 0x132   :  { %v157_v4 = vsel %vm155_vm2, %v156_v0, %v154_v1 }
 0x133   :  { %864 = vmatmul.msk.f32.vlgmr.msra.gmra.mxu2 %vm182_vm1, %v157_v4  ;;  %v162_v5 = vsub.f32 1.5, %v161_v2 }
 0x135   :  { %v163_v8 = vmul.f32 %v963_v56, %v162_v5 }
 0x137   :  { %v164_v10 = vmul.f32 %v163_v8, %v144_v44 }
 0x139   :  { %v166_v14 = vsel %vm165_vm3, %v144_v44, %v164_v10 }
 0x13a   :  { %v169_v20 = vsel %vm167_vm4, %v168_v13, %v166_v14  ;;  %vm442_vm4 = vcmask 130048  }
 0x13b   :  { %865 = vmatmul.msk.f32.gmra.mxu2 %vm182_vm1, %v169_v20 }
 0x143   :  { %866 = vmatmul.msk.f32.gmra.mxu2 %vm182_vm1, %v181_v34 }
 0x193   :  { %v1249_v33 = vpop.f32.mrf.mxu1 }
 0x19b   :  { %v1257_v16 = vpop.f32.mrf.mxu1 }
 0x1a3   :  { %v1267_v59 = vpop.f32.mrf.mxu1 }
 0x1b6   :  { %v209_v35 = vpop.f32.mrf.mxu2 }
 0x1b7   :  { %221 = vrot.lane.b32.xlu0 %v209_v35, %s1034_s26 }
 0x1be   :  { %v212_v36 = vpop.f32.mrf.mxu2 }
 0x1bf   :  { %223 = vrot.lane.b32.xlu2 %v212_v36, %s1034_s26 }
 0x1c6   :  { %v215_v37 = vpop.f32.mrf.mxu2 }
 0x1c7   :  { %225 = vrot.lane.b32.xlu0 %v215_v37, %s1034_s26  ;;  %910 = vrot.lane.b32.xlu2 %v1263_v47, %s1032_s27 }
 0x219   :  { %v224_v17 = vpop.permute.xlu2 %223 }
 0x21a   :  { %v231_v39 = vadd.f32 %v224_v17, %v1257_v16 }
 0x21c   :  { %v239_v40 = vadd.f32 %v236_v18, %v231_v39 }
 0x21e   :  { %v868_v41 = vmul.f32 -1.442695, %v239_v40 }
 0x220   :  { %964 = vpow2.f32 %v868_v41 }
 0x226   :  { %v965_v42 = vpop.eup %964 }
 0x227   :  { %v251_v43 = vadd.f32 1.0, %v965_v42 }
 0x229   :  { %966 = vrcp.f32 %v251_v43  ;;  %v222_v44 = vpop.permute.xlu0 %221  ;;  %v279_v52 = vand.u32 2147483648, %v251_v43  ;;  %v277_v54 = vand.u32 2147483647, %v251_v43  ;;  %vm273_vm8 = vweird.f32 %v251_v43 }
 0x22a   :  { %v230_v45 = vadd.f32 %v222_v44, %v1249_v33 }
 0x22b   :  { %v280_v60 = vor.u32 1.1754944e-38, %v279_v52  ;;  %vm278_vm10 = vcmp.eq.f32.partialorder %v277_v54, 8.507059e+37 }
 0x22c   :  { %v238_v46 = vadd.f32 %v236_v18, %v230_v45 }
 0x22e   :  { %v867_v48 = vmul.f32 -1.442695, %v238_v46 }
 0x22f   :  { %v967_v49 = vpop.eup %966 }
 0x230   :  { %968 = vpow2.f32 %v867_v48  ;;  %v269_v50 = vmul.f32 %v967_v49, %v251_v43  ;;  %vm274_vm7 = vweird.f32 %v967_v49 }
 0x231   :  { %vm275_vm9 = vmor %vm273_vm8, %vm274_vm7 }
 0x232   :  { %v270_v51 = vsub.f32 1.0, %v269_v50 }
 0x234   :  { %v271_v53 = vmul.f32 %v967_v49, %v270_v51 }
 0x236   :  { %v969_v56 = vpop.eup %968  ;;  %v272_v57 = vadd.f32 %v967_v49, %v271_v53 }
 0x237   :  { %v250_v58 = vadd.f32 1.0, %v969_v56 }
 0x238   :  { %v276_v61 = vsel %vm275_vm9, %v967_v49, %v272_v57 }
 0x239   :  { %970 = vrcp.f32 %v250_v58  ;;  %v226_v62 = vpop.permute.xlu0 %225  ;;  %v281_v63 = vsel %vm278_vm10, %v280_v60, %v276_v61  ;;  %v264_v7 = vand.u32 2147483648, %v250_v58  ;;  %v262_v9 = vand.u32 2147483647, %v250_v58 }
 0x23a   :  { %v232_v0 = vadd.f32 %v226_v62, %v1267_v59  ;;  %v299_v1 = vmul.f32 %v281_v63, %v239_v40  ;;  %vm258_vm12 = vweird.f32 %v250_v58  ;;  %v911_v40 = vpop.permute.xlu2 %910 }
 0x23b   :  { %v265_v13 = vor.u32 1.1754944e-38, %v264_v7  ;;  %vm263_vm14 = vcmp.eq.f32.partialorder %v262_v9, 8.507059e+37  ;;  %v912_v42 = vunpack.i.l.bf16 %v911_v40  ;;  %v913_v43 = vunpack.i.h.bf16 %v911_v40 }
 0x23c   :  { %v240_v2 = vadd.f32 %v236_v18, %v232_v0  ;;  %306 = vrot.lane.b32.xlu1 %v299_v1, %s1035_s1  ;;  %v906_v18 = vpop.permute.xlu1 %905 }
 0x23d   :  { %v907_v39 = vunpack.i.l.bf16 %v906_v18  ;;  %v908_v41 = vunpack.i.h.bf16 %v906_v18  ;;  %v1358_v18 = vld [vmem:[%s1409_s2 + $0x18] sm:$0xff] }
 0x23e   :  { %v869_v3 = vmul.f32 -1.442695, %v240_v2  ;;  %v939_v40 = vpack.i.bf16 %v1358_v18, %v1166_v27 }
 0x23f   :  { %v971_v4 = vpop.eup %970  ;;  %347 = vmatpush.msra.mxu3 %v907_v39 }
 0x240   :  { %972 = vpow2.f32 %v869_v3  ;;  %v254_v5 = vmul.f32 %v971_v4, %v250_v58  ;;  %vm259_vm11 = vweird.f32 %v971_v4 }
 0x241   :  { %vm260_vm13 = vmor %vm258_vm12, %vm259_vm11  ;;  %348 = vmatpush.msra.mxu3 %v908_v41  ;;  %v1366_v41 = vld [vmem:[%s1409_s2 + $0x8] sm:$0xff]  ;;  %vm633_vm12 = vcmask 105472  }
 0x242   :  { %v255_v6 = vsub.f32 1.0, %v254_v5 }
 0x243   :  { %349 = vmatpush.msra.mxu3 %v912_v42  ;;  %v944_v42 = vpack.i.bf16 %v1366_v41, %v1172_v28 }
 0x244   :  { %v256_v8 = vmul.f32 %v971_v4, %v255_v6 }
 0x245   :  { %350 = vmatpush.msra.mxu3 %v913_v43  ;;  %v26_v43 = vld [vmem:[%s1409_s2 + $0x28] sm:$0xff] }
 0x246   :  { %v973_v10 = vpop.eup %972  ;;  %v257_v11 = vadd.f32 %v971_v4, %v256_v8 }
 0x247   :  { %v252_v12 = vadd.f32 1.0, %v973_v10 }
 0x248   :  { %v261_v14 = vsel %vm260_vm13, %v971_v4, %v257_v11 }
 0x249   :  { %974 = vrcp.f32 %v252_v12  ;;  %v266_v15 = vsel %vm263_vm14, %v265_v13, %v261_v14  ;;  %v294_v30 = vand.u32 2147483648, %v252_v12  ;;  %v292_v32 = vand.u32 2147483647, %v252_v12 }
 0x24a   :  { %v298_v20 = vmul.f32 %v266_v15, %v238_v46  ;;  %vm288_vm0 = vweird.f32 %v252_v12 }
 0x24b   :  { %v295_v35 = vor.u32 1.1754944e-38, %v294_v30  ;;  %vm293_vm3 = vcmp.eq.f32.partialorder %v292_v32, 8.507059e+37 }
 0x24c   :  { %304 = vrot.lane.b32.xlu0 %v298_v20, %s1035_s1 }
 0x24f   :  { %v975_v22 = vpop.eup %974 }
 0x250   :  { %v284_v24 = vmul.f32 %v975_v22, %v252_v12  ;;  %vm289_vm15 = vweird.f32 %v975_v22 }
 0x251   :  { %vm290_vm2 = vmor %vm288_vm0, %vm289_vm15 }
 0x252   :  { %v285_v29 = vsub.f32 1.0, %v284_v24 }
 0x254   :  { %326 = vrot.lane.b32.xlu0 %v1201_v55, %s1032_s27  ;;  %v286_v31 = vmul.f32 %v975_v22, %v285_v29 }
 0x256   :  { %v287_v34 = vadd.f32 %v975_v22, %v286_v31 }
 0x258   :  { %v291_v36 = vsel %vm290_vm2, %v975_v22, %v287_v34 }
 0x259   :  { %v296_v37 = vsel %vm293_vm3, %v295_v35, %v291_v36 }
 0x25a   :  { %v300_v17 = vmul.f32 %v296_v37, %v240_v2 }
 0x25c   :  { %457 = vrot.lane.b32.xlu0 %v1249_v33, %s1036_s19  ;;  %308 = vrot.lane.b32.xlu2 %v300_v17, %s1035_s1  ;;  %v29_v33 = vld [vmem:[%s1409_s2 + $0x40] sm:$0xff]  ;;  %v28_v17 = vld [vmem:[%s1409_s2 + $0x38] sm:$0xff] }
 0x25d   :  { %v929_v39 = vpack.i.bf16 %v28_v17, %v1155_v25  ;;  %v934_v25 = vpack.i.bf16 %v26_v43, %v1160_v26 }
 0x264   :  { %920 = vrot.lane.b32.xlu2 %v1253_v38, %s1033_s28  ;;  %v30_v38 = vld [vmem:[%s1409_s2 + $0x50] sm:$0xff]  ;;  %s1038_s2 = smov 125  }
 0x265   :  { %v914_v44 = vpack.i.bf16 %v29_v33, %v30_v38 }
 0x267   :  { %915 = vrot.lane.b32.xlu1 %v914_v44, %s1033_s28 }
 0x26c   :  { %455 = vrot.lane.b32.xlu2 %v1134_v19, %s1036_s19 }
 0x26f   :  { %925 = vrot.lane.b32.xlu1 %v1263_v47, %s1033_s28 }
 0x2ae   :  { %v307_v45 = vpop.permute.xlu1 %306 }
 0x2b6   :  { %v309_v46 = vpop.permute.xlu2 %308 }
 0x2be   :  { %v305_v19 = vpop.permute.xlu0 %304 }
 0x2bf   :  { %870 = vmatmul.msk.f32.vlgmr.msra.gmra.mxu3 %vm182_vm1, %v305_v19 }
 0x2c6   :  { %v327_v50 = vpop.permute.xlu0 %326 }
 0x2c7   :  { %871 = vmatmul.msk.f32.gmra.mxu3 %vm182_vm1, %v307_v45 }
 0x2ce   :  { %v458_v0 = vpop.permute.xlu0 %457 }
 0x2cf   :  { %872 = vmatmul.msk.f32.gmra.mxu3 %vm182_vm1, %v309_v46 }
 0x2d9   :  { %v916_v48 = vpop.permute.xlu1 %915 }
 0x2da   :  { %v917_v49 = vunpack.i.l.bf16 %v916_v48  ;;  %v918_v52 = vunpack.i.h.bf16 %v916_v48 }
 0x2dc   :  { %516 = vmatpush.msrb.mxu2 %v917_v49 }
 0x2de   :  { %517 = vmatpush.msrb.mxu2 %v918_v52 }
 0x2e1   :  { %v926_v61 = vpop.permute.xlu1 %925 }
 0x2e2   :  { %v927_v62 = vunpack.i.l.bf16 %v926_v61 }
 0x342   :  { %v352_v51 = vpop.f32.mrf.mxu3 }
 0x343   :  { %v1293_v53 = vadd.f32 %v352_v51, %v327_v50 }
 0x345   :  { %433 = vrot.lane.b32.xlu1 %v1293_v53, %s1034_s26  ;;  %424 = vrot.lane.b32.xlu0 %v1293_v53, %s1035_s1 }
 0x34a   :  { %v355_v47 = vpop.f32.mrf.mxu3 }
 0x34b   :  { %v1299_v54 = vadd.f32 %v355_v47, %v327_v50 }
 0x34d   :  { %426 = vrot.lane.b32.xlu2 %v1299_v54, %s1035_s1  ;;  %459 = vrot.lane.b32.xlu1 %v1139_v21, %s1036_s19  ;;  %v921_v21 = vpop.permute.xlu2 %920 }
 0x34e   :  { %435 = vrot.lane.b32.xlu0 %v1299_v54, %s1034_s26  ;;  %v922_v58 = vunpack.i.l.bf16 %v921_v21  ;;  %v923_v60 = vunpack.i.h.bf16 %v921_v21 }
 0x350   :  { %518 = vmatpush.msrb.mxu2 %v922_v58 }
 0x352   :  { %v358_v56 = vpop.f32.mrf.mxu3  ;;  %519 = vmatpush.msrb.mxu2 %v923_v60 }
 0x353   :  { %v1307_v57 = vadd.f32 %v358_v56, %v327_v50 }
 0x354   :  { %520 = vmatpush.msrb.mxu2 %v927_v62 }
 0x355   :  { %461 = vrot.lane.b32.xlu2 %v1257_v16, %s1036_s19  ;;  %437 = vrot.lane.b32.xlu1 %v1307_v57, %s1034_s26  ;;  %v928_v16 = vunpack.i.h.bf16 %v926_v61  ;;  %v456_v63 = vpop.permute.xlu2 %455 }
 0x356   :  { %428 = vrot.lane.b32.xlu0 %v1307_v57, %s1035_s1 }
 0x357   :  { %521 = vmatpush.msrb.mxu2 %v928_v16 }
 0x35d   :  { %463 = vrot.lane.b32.xlu2 %v1145_v23, %s1036_s19 }
 0x35e   :  { %465 = vrot.lane.b32.xlu0 %v1267_v59, %s1036_s19  ;;  %v467_v59 = vsel %vm182_vm1, %v456_v63, %v458_v0 }
 0x3a7   :  { %v427_v1 = vpop.permute.xlu2 %426 }
 0x3a8   :  { %v444_v8 = vsel %vm442_vm4, %v427_v1, %v1299_v54 }
 0x3af   :  { %v462_v6 = vpop.permute.xlu2 %461 }
 0x3b7   :  { %v434_v2 = vpop.permute.xlu1 %433  ;;  %v425_v3 = vpop.permute.xlu0 %424 }
 0x3b8   :  { %v443_v23 = vsel %vm442_vm4, %v425_v3, %v1293_v53  ;;  %v464_v20 = vpop.permute.xlu2 %463 }
 0x3b9   :  { %v446_v4 = vsel %vm182_vm1, %v443_v23, %v434_v2 }
 0x3ba   :  { %v473_v5 = vmul.f32 %v467_v59, %v446_v4 }
 0x3bc   :  { %876 = vmatmul.msk.f32.vlgmr.msrb.gmra.mxu2 %vm496_vm5, %v473_v5 }
 0x3bf   :  { %v460_v7 = vpop.permute.xlu1 %459 }
 0x3c0   :  { %v468_v9 = vsel %vm182_vm1, %v460_v7, %v462_v6  ;;  %v436_v10 = vpop.permute.xlu0 %435 }
 0x3c1   :  { %v447_v11 = vsel %vm182_vm1, %v444_v8, %v436_v10 }
 0x3c2   :  { %v474_v12 = vmul.f32 %v468_v9, %v447_v11 }
 0x3c4   :  { %877 = vmatmul.msk.f32.gmra.mxu2 %vm496_vm5, %v474_v12 }
 0x3c7   :  { %v438_v14 = vpop.permute.xlu1 %437 }
 0x3c8   :  { %v429_v13 = vpop.permute.xlu0 %428 }
 0x3c9   :  { %v445_v15 = vsel %vm442_vm4, %v429_v13, %v1307_v57 }
 0x3ca   :  { %v448_v24 = vsel %vm182_vm1, %v445_v15, %v438_v14 }
 0x3d0   :  { %v466_v22 = vpop.permute.xlu0 %465 }
 0x3d1   :  { %v469_v29 = vsel %vm182_vm1, %v464_v20, %v466_v22 }
 0x3d2   :  { %v475_v30 = vmul.f32 %v469_v29, %v448_v24 }
 0x3d4   :  { %878 = vmatmul.msk.f32.gmra.mxu2 %vm496_vm5, %v475_v30 }
 0x43f   :  { %v1334_v31 = vpop.f32.mrf.mxu2 }
 0x440   :  { %v532_v32 = vmul.f32 %v1334_v31, %v1334_v31 }
 0x442   :  { %550 = vrot.lane.b32.xlu2 %v532_v32, %s1032_s27  ;;  %538 = vrot.lane.b32.xlu1 %v532_v32, %s1035_s1 }
 0x447   :  { %v1340_v34 = vpop.f32.mrf.mxu2 }
 0x448   :  { %v533_v35 = vmul.f32 %v1340_v34, %v1340_v34 }
 0x44a   :  { %552 = vrot.lane.b32.xlu1 %v533_v35, %s1032_s27  ;;  %540 = vrot.lane.b32.xlu0 %v533_v35, %s1035_s1 }
 0x452   :  { %930 = vrot.lane.b32.xlu1 %v929_v39, %s1037_s3 }
 0x457   :  { %v1346_v36 = vpop.f32.mrf.mxu2 }
 0x458   :  { %v534_v37 = vmul.f32 %v1346_v36, %v1346_v36 }
 0x45a   :  { %554 = vrot.lane.b32.xlu0 %v534_v37, %s1032_s27  ;;  %542 = vrot.lane.b32.xlu2 %v534_v37, %s1035_s1 }
 0x45b   :  { %945 = vrot.lane.b32.xlu1 %v944_v42, %s1037_s3 }
 0x462   :  { %940 = vrot.lane.b32.xlu0 %v939_v40, %s1037_s3  ;;  %935 = vrot.lane.b32.xlu2 %v934_v25, %s1037_s3 }
 0x49c   :  { %v551_v38 = vpop.permute.xlu2 %550 }
 0x4b4   :  { %v539_v27 = vpop.permute.xlu1 %538  ;;  %v543_v56 = vpop.permute.xlu2 %542 }
 0x4b5   :  { %v547_v33 = vadd.f32 %v539_v27, %v532_v32  ;;  %v549_v58 = vadd.f32 %v543_v56, %v534_v37  ;;  %v873_v32 = vmul.f32 -1.442695, %v1293_v53 }
 0x4b7   :  { %v559_v44 = vadd.f32 %v551_v38, %v547_v33 }
 0x4b9   :  { %976 = vrsqrt.f32 %v559_v44  ;;  %vm569_vm6 = vcmp.eq.f32.partialorder %v559_v44, inf  ;;  %v572_v16 = vand.u32 2147483648, %v559_v44  ;;  %vm571_vm7 = vcmp.eq.f32.partialorder %v559_v44, 0.0 }
 0x4bc   :  { %v541_v19 = vpop.permute.xlu0 %540  ;;  %v553_v46 = vpop.permute.xlu1 %552 }
 0x4bd   :  { %v548_v45 = vadd.f32 %v541_v19, %v533_v35  ;;  %v936_v39 = vpop.permute.xlu2 %935 }
 0x4be   :  { %v938_v40 = vunpack.i.h.bf16 %v936_v39  ;;  %v937_v42 = vunpack.i.l.bf16 %v936_v39 }
 0x4bf   :  { %v977_v48 = vpop.eup %976  ;;  %v560_v49 = vadd.f32 %v553_v46, %v548_v45 }
 0x4c0   :  { %v563_v50 = vmul.f32 %v977_v48, %v559_v44  ;;  %v636_v43 = vsel %vm633_vm12, %v937_v42, %v938_v40 }
 0x4c1   :  { %978 = vrsqrt.f32 %v560_v49  ;;  %vm581_vm8 = vcmp.eq.f32.partialorder %v560_v49, inf  ;;  %v584_v4 = vand.u32 2147483648, %v560_v49  ;;  %vm583_vm9 = vcmp.eq.f32.partialorder %v560_v49, 0.0 }
 0x4c2   :  { %v564_v28 = vmul.f32 %v977_v48, %v563_v50  ;;  %v874_v50 = vmul.f32 -1.442695, %v1299_v54 }
 0x4c4   :  { %v565_v51 = vmul.f32 0.5, %v564_v28  ;;  %v931_v22 = vpop.permute.xlu1 %930 }
 0x4c5   :  { %v933_v24 = vunpack.i.h.bf16 %v931_v22  ;;  %v932_v29 = vunpack.i.l.bf16 %v931_v22 }
 0x4c6   :  { %v566_v52 = vsub.f32 1.5, %v565_v51 }
 0x4c7   :  { %v979_v47 = vpop.eup %978  ;;  %v637_v30 = vsel %vm633_vm12, %v932_v29, %v933_v24 }
 0x4c8   :  { %v567_v21 = vmul.f32 %v977_v48, %v566_v52  ;;  %v575_v26 = vmul.f32 %v979_v47, %v560_v49  ;;  %666 = vmatpush.msrb.mxu3 %v637_v30 }
 0x4ca   :  { %v568_v60 = vmul.f32 %v567_v21, %v559_v44  ;;  %v576_v61 = vmul.f32 %v979_v47, %v575_v26  ;;  %667 = vmatpush.msrb.mxu3 %v636_v43 }
 0x4cc   :  { %v555_v62 = vpop.permute.xlu0 %554  ;;  %v570_v0 = vsel %vm569_vm6, %v559_v44, %v568_v60  ;;  %v577_v1 = vmul.f32 0.5, %v576_v61 }
 0x4cd   :  { %v561_v63 = vadd.f32 %v555_v62, %v549_v58  ;;  %v573_v2 = vsel %vm571_vm7, %v572_v16, %v570_v0  ;;  %v946_v33 = vpop.permute.xlu1 %945  ;;  %v875_v58 = vmul.f32 -1.442695, %v1307_v57 }
 0x4ce   :  { %601 = vrot.lane.b32.xlu2 %v573_v2, %s1034_s26  ;;  %v578_v3 = vsub.f32 1.5, %v577_v1  ;;  %v948_v44 = vunpack.i.h.bf16 %v946_v33  ;;  %v947_v19 = vunpack.i.l.bf16 %v946_v33 }
 0x4cf   :  { %980 = vrsqrt.f32 %v561_v63  ;;  %vm593_vm10 = vcmp.eq.f32.partialorder %v561_v63, inf  ;;  %v596_v14 = vand.u32 2147483648, %v561_v63  ;;  %vm595_vm11 = vcmp.eq.f32.partialorder %v561_v63, 0.0 }
 0x4d0   :  { %v579_v23 = vmul.f32 %v979_v47, %v578_v3  ;;  %982 = vpow2.f32 %v873_v32  ;;  %v634_v45 = vsel %vm633_vm12, %v947_v19, %v948_v44 }
 0x4d2   :  { %v580_v59 = vmul.f32 %v579_v23, %v560_v49 }
 0x4d4   :  { %v582_v6 = vsel %vm581_vm8, %v560_v49, %v580_v59  ;;  %v941_v35 = vpop.permute.xlu0 %940  ;;  %v949_v59 = vpack.i.bf16 %v1366_v41, %v1358_v18 }
 0x4d5   :  { %v981_v5 = vpop.eup %980  ;;  %v585_v7 = vsel %vm583_vm9, %v584_v4, %v582_v6  ;;  %v943_v37 = vunpack.i.h.bf16 %v941_v35  ;;  %v942_v17 = vunpack.i.l.bf16 %v941_v35 }
 0x4d6   :  { %v587_v8 = vmul.f32 %v981_v5, %v561_v63  ;;  %603 = vrot.lane.b32.xlu0 %v585_v7, %s1034_s26  ;;  %642 = vrot.lane.b32.xlu2 %v1201_v55, %s1033_s28  ;;  %v983_v27 = vpop.eup %982  ;;  %s1039_s28 = smov 48  }
 0x4d7   :  { %v635_v25 = vsel %vm633_vm12, %v942_v17, %v943_v37  ;;  %v370_v38 = vadd.f32 1.0, %v983_v27 }
 0x4d8   :  { %v588_v9 = vmul.f32 %v981_v5, %v587_v8  ;;  %668 = vmatpush.msrb.mxu3 %v635_v25 }
 0x4d9   :  { %984 = vrcp.f32 %v370_v38  ;;  %v384_v52 = vand.u32 2147483648, %v370_v38  ;;  %vm378_vm14 = vweird.f32 %v370_v38  ;;  %v382_v47 = vand.u32 2147483647, %v370_v38 }
 0x4da   :  { %v589_v10 = vmul.f32 0.5, %v588_v9  ;;  %669 = vmatpush.msrb.mxu3 %v634_v45  ;;  %986 = vpow2.f32 %v874_v50 }
 0x4db   :  { %v385_v26 = vor.u32 1.1754944e-38, %v384_v52  ;;  %vm383_vm0 = vcmp.eq.f32.partialorder %v382_v47, 8.507059e+37  ;;  %988 = vpow2.f32 %v875_v58 }
 0x4dc   :  { %v590_v11 = vsub.f32 1.5, %v589_v10 }
 0x4de   :  { %v591_v12 = vmul.f32 %v981_v5, %v590_v11  ;;  %950 = vrot.lane.b32.xlu0 %v949_v59, %s1038_s2 }
 0x4df   :  { %v985_v46 = vpop.eup %984 }
 0x4e0   :  { %v592_v13 = vmul.f32 %v591_v12, %v561_v63  ;;  %v374_v48 = vmul.f32 %v985_v46, %v370_v38  ;;  %vm379_vm13 = vweird.f32 %v985_v46  ;;  %v987_v56 = vpop.eup %986 }
 0x4e1   :  { %vm380_vm15 = vmor %vm378_vm14, %vm379_vm13  ;;  %v371_v60 = vadd.f32 1.0, %v987_v56  ;;  %v989_v0 = vpop.eup %988 }
 0x4e2   :  { %v594_v15 = vsel %vm593_vm10, %v561_v63, %v592_v13  ;;  %v375_v49 = vsub.f32 1.0, %v374_v48  ;;  %v372_v2 = vadd.f32 1.0, %v989_v0 }
 0x4e3   :  { %v597_v20 = vsel %vm595_vm11, %v596_v14, %v594_v15  ;;  %990 = vrcp.f32 %v371_v60  ;;  %v399_v6 = vand.u32 2147483648, %v371_v60  ;;  %vm393_vm3 = vweird.f32 %v371_v60 }
 0x4e4   :  { %605 = vrot.lane.b32.xlu1 %v597_v20, %s1034_s26  ;;  %v376_v28 = vmul.f32 %v985_v46, %v375_v49  ;;  %992 = vrcp.f32 %v372_v2  ;;  %v397_v8 = vand.u32 2147483647, %v371_v60  ;;  %v414_v20 = vand.u32 2147483648, %v372_v2  ;;  %s1041_s26 = smov 80  }
 0x4e5   :  { %v400_v10 = vor.u32 1.1754944e-38, %v399_v6  ;;  %vm408_vm8 = vweird.f32 %v372_v2  ;;  %v412_v22 = vand.u32 2147483647, %v372_v2 }
 0x4e6   :  { %v377_v51 = vadd.f32 %v985_v46, %v376_v28  ;;  %vm398_vm6 = vcmp.eq.f32.partialorder %v397_v8, 8.507059e+37  ;;  %v415_v29 = vor.u32 1.1754944e-38, %v414_v20 }
 0x4e7   :  { %vm413_vm10 = vcmp.eq.f32.partialorder %v412_v22, 8.507059e+37 }
 0x4e8   :  { %v381_v21 = vsel %vm380_vm15, %v985_v46, %v377_v51 }
 0x4e9   :  { %v386_v61 = vsel %vm383_vm0, %v385_v26, %v381_v21  ;;  %v991_v1 = vpop.eup %990 }
 0x4ea   :  { %v418_v62 = vmul.f32 %v386_v61, %v1293_v53  ;;  %v389_v3 = vmul.f32 %v991_v1, %v371_v60  ;;  %v993_v5 = vpop.eup %992  ;;  %vm394_vm2 = vweird.f32 %v991_v1 }
 0x4eb   :  { %v404_v7 = vmul.f32 %v993_v5, %v372_v2  ;;  %vm395_vm5 = vmor %vm393_vm3, %vm394_vm2  ;;  %vm409_vm7 = vweird.f32 %v993_v5 }
 0x4ec   :  { %v390_v23 = vsub.f32 1.0, %v389_v3  ;;  %vm410_vm9 = vmor %vm408_vm8, %vm409_vm7  ;;  %746 = vrot.lane.b32.xlu1 %v1201_v55, %s1039_s28 }
 0x4ed   :  { %v405_v11 = vsub.f32 1.0, %v404_v7 }
 0x4ee   :  { %v391_v4 = vmul.f32 %v991_v1, %v390_v23 }
 0x4ef   :  { %v406_v13 = vmul.f32 %v993_v5, %v405_v11 }
 0x4f0   :  { %v392_v53 = vadd.f32 %v991_v1, %v391_v4 }
 0x4f1   :  { %v407_v15 = vadd.f32 %v993_v5, %v406_v13 }
 0x4f2   :  { %v396_v9 = vsel %vm395_vm5, %v991_v1, %v392_v53 }
 0x4f3   :  { %v401_v12 = vsel %vm398_vm6, %v400_v10, %v396_v9  ;;  %v411_v24 = vsel %vm410_vm9, %v993_v5, %v407_v15  ;;  %v1040_v15 = vmov 1  }
 0x4f4   :  { %v419_v14 = vmul.f32 %v401_v12, %v1299_v54  ;;  %v416_v30 = vsel %vm413_vm10, %v415_v29, %v411_v24  ;;  %954 = vset.pattern.permute.xlu2 %v1040_v15  ;;  %955 = vset.pattern.permute.xlu0 %v1040_v15 }
 0x4f5   :  { %v420_v32 = vmul.f32 %v416_v30, %v1307_v57  ;;  %956 = vset.pattern.permute.xlu1 %v1040_v15 }
 0x528   :  { %v602_v16 = vpop.permute.xlu2 %601 }
 0x529   :  { %v610_v63 = vsel %vm442_vm4, %v418_v62, %v602_v16 }
 0x52a   :  { %879 = vmatmul.msk.f32.vlgmr.msrb.gmra.mxu3 %vm182_vm1, %v610_v63 }
 0x530   :  { %v643_v39 = vpop.permute.xlu2 %642 }
 0x548   :  { %v604_v18 = vpop.permute.xlu0 %603 }
 0x549   :  { %v611_v41 = vsel %vm442_vm4, %v419_v14, %v604_v18 }
 0x54a   :  { %880 = vmatmul.msk.f32.gmra.mxu3 %vm182_vm1, %v611_v41 }
 0x550   :  { %v951_v37 = vpop.permute.xlu0 %950 }
 0x551   :  { %v952_v17 = vunpack.i.l.bf16 %v951_v37  ;;  %v953_v40 = vunpack.i.h.bf16 %v951_v37 }
 0x553   :  { %772 = vmatpush.msrb.mxu0 %v952_v17  ;;  %888 = vmatpush.msrb.mxu1 %v952_v17 }
 0x554   :  { %889 = vmatpush.msra.mxu2 %v952_v17 }
 0x555   :  { %773 = vmatpush.msrb.mxu0 %v953_v40  ;;  %890 = vmatpush.msrb.mxu1 %v953_v40 }
 0x556   :  { %v606_v35 = vpop.permute.xlu1 %605  ;;  %891 = vmatpush.msra.mxu2 %v953_v40 }
 0x557   :  { %v612_v54 = vsel %vm442_vm4, %v420_v32, %v606_v35 }
 0x558   :  { %881 = vmatmul.msk.f32.gmra.mxu3 %vm182_vm1, %v612_v54 }
 0x55e   :  { %v747_v20 = vpop.permute.xlu1 %746 }
 0x5ad   :  { %v671_v42 = vpop.f32.mrf.mxu3 }
 0x5ae   :  { %v672_v43 = vadd.f32 %v671_v42, %v643_v39 }
 0x5b0   :  { %v882_v57 = vmul.f32 -1.442695, %v672_v43 }
 0x5b2   :  { %994 = vpow2.f32 %v882_v57 }
 0x5b8   :  { %v995_v25 = vpop.eup %994 }
 0x5b9   :  { %v689_v27 = vadd.f32 1.0, %v995_v25 }
 0x5bb   :  { %996 = vrcp.f32 %v689_v27  ;;  %v703_v44 = vand.u32 2147483648, %v689_v27  ;;  %v701_v45 = vand.u32 2147483647, %v689_v27  ;;  %vm697_vm11 = vweird.f32 %v689_v27 }
 0x5bd   :  { %v704_v48 = vor.u32 1.1754944e-38, %v703_v44  ;;  %vm702_vm13 = vcmp.eq.f32.partialorder %v701_v45, 8.507059e+37 }
 0x5c1   :  { %v997_v33 = vpop.eup %996 }
 0x5c2   :  { %v693_v38 = vmul.f32 %v997_v33, %v689_v27  ;;  %vm698_vm1 = vweird.f32 %v997_v33 }
 0x5c3   :  { %vm699_vm12 = vmor %vm697_vm11, %vm698_vm1 }
 0x5c4   :  { %v694_v55 = vsub.f32 1.0, %v693_v38 }
 0x5c6   :  { %v695_v19 = vmul.f32 %v997_v33, %v694_v55 }
 0x5c8   :  { %v696_v46 = vadd.f32 %v997_v33, %v695_v19 }
 0x5ca   :  { %v700_v49 = vsel %vm699_vm12, %v997_v33, %v696_v46 }
 0x5cb   :  { %v705_v50 = vsel %vm702_vm13, %v704_v48, %v700_v49 }
 0x5cc   :  { %v737_v28 = vmul.f32 %v705_v50, %v672_v43 }
 0x5cd   :  { %v674_v51 = vpop.f32.mrf.mxu3 }
 0x5ce   :  { %v675_v52 = vadd.f32 %v674_v51, %v643_v39  ;;  %885 = vmatmul.msk.f32.vlgmr.msrb.gmra.mxu0 %vm442_vm4, %v737_v28 }
 0x5d0   :  { %v883_v47 = vmul.f32 -1.442695, %v675_v52 }
 0x5d2   :  { %998 = vpow2.f32 %v883_v47 }
 0x5d8   :  { %v999_v56 = vpop.eup %998 }
 0x5d9   :  { %v690_v21 = vadd.f32 1.0, %v999_v56 }
 0x5db   :  { %v677_v26 = vpop.f32.mrf.mxu3  ;;  %1000 = vrcp.f32 %v690_v21  ;;  %v718_v63 = vand.u32 2147483648, %v690_v21  ;;  %v716_v2 = vand.u32 2147483647, %v690_v21  ;;  %vm712_vm15 = vweird.f32 %v690_v21 }
 0x5dc   :  { %v678_v58 = vadd.f32 %v677_v26, %v643_v39 }
 0x5dd   :  { %v719_v59 = vor.u32 1.1754944e-38, %v718_v63  ;;  %vm717_vm2 = vcmp.eq.f32.partialorder %v716_v2, 8.507059e+37 }
 0x5de   :  { %v884_v60 = vmul.f32 -1.442695, %v678_v58 }
 0x5e0   :  { %1002 = vpow2.f32 %v884_v60 }
 0x5e1   :  { %v1001_v61 = vpop.eup %1000 }
 0x5e2   :  { %v708_v62 = vmul.f32 %v1001_v61, %v690_v21  ;;  %vm713_vm14 = vweird.f32 %v1001_v61 }
 0x5e3   :  { %vm714_vm0 = vmor %vm712_vm15, %vm713_vm14 }
 0x5e4   :  { %v709_v16 = vsub.f32 1.0, %v708_v62 }
 0x5e6   :  { %v1003_v0 = vpop.eup %1002  ;;  %v710_v1 = vmul.f32 %v1001_v61, %v709_v16 }
 0x5e7   :  { %v691_v3 = vadd.f32 1.0, %v1003_v0 }
 0x5e8   :  { %v711_v23 = vadd.f32 %v1001_v61, %v710_v1 }
 0x5e9   :  { %1004 = vrcp.f32 %v691_v3  ;;  %v733_v9 = vand.u32 2147483648, %v691_v3  ;;  %v731_v11 = vand.u32 2147483647, %v691_v3  ;;  %vm727_vm5 = vweird.f32 %v691_v3 }
 0x5ea   :  { %v715_v4 = vsel %vm714_vm0, %v1001_v61, %v711_v23 }
 0x5eb   :  { %v720_v5 = vsel %vm717_vm2, %v719_v59, %v715_v4  ;;  %v734_v13 = vor.u32 1.1754944e-38, %v733_v9  ;;  %vm732_vm7 = vcmp.eq.f32.partialorder %v731_v11, 8.507059e+37 }
 0x5ec   :  { %v738_v53 = vmul.f32 %v720_v5, %v675_v52 }
 0x5ee   :  { %886 = vmatmul.msk.f32.vlgmr.msrb.gmra.mxu1 %vm442_vm4, %v738_v53 }
 0x5ef   :  { %v1005_v6 = vpop.eup %1004 }
 0x5f0   :  { %v723_v7 = vmul.f32 %v1005_v6, %v691_v3  ;;  %vm728_vm3 = vweird.f32 %v1005_v6 }
 0x5f1   :  { %vm729_vm6 = vmor %vm727_vm5, %vm728_vm3 }
 0x5f2   :  { %v724_v8 = vsub.f32 1.0, %v723_v7 }
 0x5f4   :  { %v725_v10 = vmul.f32 %v1005_v6, %v724_v8 }
 0x5f6   :  { %v726_v12 = vadd.f32 %v1005_v6, %v725_v10 }
 0x5f8   :  { %v730_v14 = vsel %vm729_vm6, %v1005_v6, %v726_v12 }
 0x5f9   :  { %v735_v18 = vsel %vm732_vm7, %v734_v13, %v730_v14 }
 0x5fa   :  { %v739_v41 = vmul.f32 %v735_v18, %v678_v58 }
 0x5fc   :  { %887 = vmatmul.msk.f32.vlgmr.msra.gmra.mxu2 %vm442_vm4, %v739_v41  ;;  %vm846_vm4 = vcmask 149504  }
 0x64b   :  { %v775_v22 = vpop.f32.mrf.mxu0 }
 0x64c   :  { %v776_v24 = vadd.f32 %v775_v22, %v747_v20 }
 0x64e   :  { %786 = vperm.xlu2 %954, %v776_v24  }
 0x66b   :  { %v778_v29 = vpop.f32.mrf.mxu1 }
 0x66c   :  { %v779_v30 = vadd.f32 %v778_v29, %v747_v20 }
 0x66e   :  { %791 = vperm.xlu0 %955, %v779_v30  }
 0x67f   :  { %v781_v32 = vpop.f32.mrf.mxu2 }
 0x680   :  { %v782_v35 = vadd.f32 %v781_v32, %v747_v20 }
 0x682   :  { %796 = vperm.xlu1 %956, %v782_v35  }
 0x6a8   :  { %v787_v54 = vpop.permute.xlu2 %786 }
 0x6a9   :  { %v799_v37 = vmul.f32 %v787_v54, %v1334_v31 }
 0x6ab   :  { %805 = vrot.lane.b32.xlu2 %v799_v37, %s1041_s26 }
 0x6e0   :  { %v792_v17 = vpop.permute.xlu0 %791 }
 0x6e1   :  { %v800_v39 = vmul.f32 %v792_v17, %v1340_v34 }
 0x6e3   :  { %807 = vrot.lane.b32.xlu1 %v800_v39, %s1041_s26 }
 0x6f4   :  { %v797_v40 = vpop.permute.xlu1 %796 }
 0x6f5   :  { %v801_v42 = vmul.f32 %v797_v40, %v1346_v36 }
 0x6f7   :  { %809 = vrot.lane.b32.xlu2 %v801_v42, %s1041_s26 }
 0x705   :  { %v806_v43 = vpop.permute.xlu2 %805 }
 0x706   :  { %814 = vxpose.xlu0.b32.start [1/3] (short) (narrow) %v806_v43, 8 }
 0x751   :  { %v810_v25 = vpop.permute.xlu2 %809 }
 0x755   :  { %v808_v57 = vpop.permute.xlu1 %807 }
 0x756   :  { %815 = vxpose.xlu0.b32.cont [2/3] (short) (narrow) %v808_v57, 8 }
 0x75e   :  { %816 = vxpose.xlu0.b32.end [3/3] (short) (narrow) %v810_v25, 8 }
 0x7f2   :  { %v830_v31 = vpop.trf.xlu0 }
 0x7f3   :  { %847 = vst.msk [vmem:[#allocation2] sm:$0x7] %vm846_vm4, %v830_v31 }
 0x7f4   :  { %858 = dma.vmem_to_hbm [thread:$0]  %s854_s8, 64, %s856_s11, [#allocation3]  }
 0x7f5   :  { %1030 = dma.done.wait [#allocation3], 64  }
 0x7f6   :  { %1031 = vsyncadd [#allocation3], 4294967232 }
 0x7f7   :  { %863 = vsyncpa [#allocation3], 1 }

</bundles_post_ra>
